<compile_context>
chip_gen: v6e
topology: v6e:2x2x1
jax: 0.10.0
libtpu: 0.0.40
codegen_flags: <defaults>
</compile_context>

<pallas_src>
import functools

import jax
import jax.numpy as jnp
from jax.experimental import pallas as pl
from jax.experimental.pallas import tpu as pltpu

LANE = 128
SUBLANE = 8


def _cdiv(a, b):
    return -(-a // b)


def _round_up(x, m):
    return _cdiv(x, m) * m


# ---------------------------------------------------------------------------
# Fused Pallas kernel: whole MLP forward for one batch tile.
# refs = (x_ref, w0_ref, b0_ref, w1_ref, b1_ref, ..., o_ref)
# ---------------------------------------------------------------------------
def _fused_mlp_kernel(*refs, relu_flags):
    x_ref = refs[0]
    o_ref = refs[-1]
    h = x_ref[...]                                   # (TB, F_in) f32
    for l, apply_relu in enumerate(relu_flags):
        w = refs[1 + 2 * l][...]                     # (F_l, F_{l+1}) bf16, padded block-diag
        b = refs[2 + 2 * l][...]                     # (1, F_{l+1})  f32
        # bf16 x bf16 on the MXU with f32 accumulation; bias add / relu in f32 (VPU).
        h = jnp.dot(h.astype(w.dtype), w, preferred_element_type=jnp.float32) + b
        if apply_relu:
            h = jnp.maximum(h, 0.0)
    o_ref[...] = h.astype(o_ref.dtype)


def fused_packed_mlp(x, layers, out_features, *, tb_cap=1024, min_batch_tiles=2):
    """Run the fused PackedMLP forward.

    x:            (B, input_size) f32
    layers:       list of (W (F_in, F_out_pad) bf16, b (1, F_out_pad) f32, relu_after)
                  dense block-diagonal, lane-padded; layer 0 already folded in.
    out_features: real (unpadded) output feature count
    returns:      (B, out_features) f32
    """
    B, f_in = x.shape
    f_out_pad = layers[-1][0].shape[1]
    relu_flags = tuple(bool(r) for _, _, r in layers)

    # Divisor-aware batch tiling: minimal padding (<8 extra rows per tile) and at
    # least `min_batch_tiles` tiles so v7x's two TensorCores both get work.
    num_tiles = max(min_batch_tiles, _cdiv(B, tb_cap))
    TB = _round_up(_cdiv(B, num_tiles), SUBLANE)
    B_pad = num_tiles * TB
    if B_pad != B:
        x = jnp.pad(x, ((0, B_pad - B), (0, 0)))

    args = [x]
    for w, b, _ in layers:
        args.append(w)
        args.append(b)

    # Explicit VMEM budget: weights (x buffer count) + io tiles + activation headroom.
    param_bytes = sum(w.size * w.dtype.itemsize + b.size * b.dtype.itemsize
                      for w, b, _ in layers)
    max_feat = max([f_in, f_out_pad] + [w.shape[1] for w, _, _ in layers])
    io_bytes = 2 * TB * (f_in + f_out_pad) * 4          # double-buffered x / out tiles
    act_bytes = 2 * TB * max_feat * 4                   # f32 intermediate headroom
    vmem_limit = 2 * param_bytes + io_bytes + act_bytes + (2 << 20)
    vmem_limit = int(min(max(vmem_limit, 4 << 20), 64 << 20))   # 64 MiB = v7x physical

    compiler_params = pltpu.CompilerParams(
        dimension_semantics=("parallel",),   # batch-tile axis; 2-TC split on v7x
        vmem_limit_bytes=vmem_limit,
    )

    kernel = functools.partial(_fused_mlp_kernel, relu_flags=relu_flags)
    out_shape = jax.ShapeDtypeStruct((B_pad, f_out_pad), x.dtype)
    out_spec = pl.BlockSpec((TB, f_out_pad), lambda i: (i, 0))
    x_spec = pl.BlockSpec((TB, f_in), lambda i: (i, 0))

    def _const_spec(shape, n_buffers):
        # Constant index_map -> block fetched once, stays VMEM-resident.
        if n_buffers is None:
            return pl.BlockSpec(shape, lambda i: (0, 0))
        return pl.BlockSpec(shape, lambda i: (0, 0),
                            pipeline_mode=pl.Buffered(n_buffers))

    def run(n_buffers):
        in_specs = [x_spec]
        for w, b, _ in layers:
            in_specs.append(_const_spec(w.shape, n_buffers))
            in_specs.append(_const_spec(b.shape, n_buffers))
        return pl.pallas_call(
            kernel,
            out_shape=out_shape,
            grid=(num_tiles,),
            in_specs=in_specs,
            out_specs=out_spec,
            compiler_params=compiler_params,
        )(*args)

    try:
        # Single-buffer the constant weight/bias blocks (they never change across
        # grid steps) -> halves their VMEM footprint; matters on v7x's 64 MiB.
        out = run(1)
    except Exception:
        # pl.Buffered(1) unsupported on this jax version -> default double buffering.
        out = run(None)

    return out[:B, :out_features]


# ---------------------------------------------------------------------------
# Parameter construction (deterministic, synthetic) — grouped PackedLinear form
# ---------------------------------------------------------------------------
def _make_layer_params(key, groups, ext_in, ext_out):
    assert ext_in % groups == 0 and ext_out % groups == 0
    in_g, out_g = ext_in // groups, ext_out // groups
    kw, kb = jax.random.split(key)
    scale = 1.0 / jnp.sqrt(jnp.float32(in_g))
    w = jax.random.normal(kw, (groups, in_g, out_g), jnp.float32) * scale
    # Keep weights bf16-representable so the bf16 kernel and the f32 reference
    # use numerically identical parameters.
    w = w.astype(jnp.bfloat16).astype(jnp.float32)
    b = jax.random.normal(kb, (ext_out,), jnp.float32) * scale
    return w, b


def init_packed_mlp(key, input_size, hidden_sizes, output_size,
                    alpha, num_estimators, gamma):
    groups = gamma * num_estimators
    layer_cfgs = [(1, input_size, hidden_sizes[0] * alpha)]            # input (first=True)
    for in_f, out_f in zip(hidden_sizes[:-1], hidden_sizes[1:]):       # hidden layers
        layer_cfgs.append((groups, in_f * alpha, out_f * alpha))
    layer_cfgs.append((groups, hidden_sizes[-1] * alpha,               # output (last=True)
                       output_size * num_estimators))
    keys = jax.random.split(key, len(layer_cfgs))
    return [_make_layer_params(k, g, ei, eo)
            for k, (g, ei, eo) in zip(keys, layer_cfgs)]


def prepare_dense_params(params, weight_dtype=jnp.bfloat16):
    """Grouped (G, in_g, out_g) weights -> dense block-diagonal, lane-padded
    matrices; fold layer 0 into layer 1 (legal: the PyTorch forward applies no
    activation between them); cast weights to `weight_dtype`.  One-time prep."""
    # TODO(synk): once per-group widths reach ~128, keep (G, in_g_pad, out_g_pad)
    # with a group grid axis instead of block-diag densification (avoids the Gx
    # FLOP / VMEM inflation).
    dense = []
    for l, (w, b) in enumerate(params):
        G, in_g, out_g = w.shape
        f_in, f_out = G * in_g, G * out_g
        f_in_pad = f_in if l == 0 else _round_up(f_in, LANE)   # x needs no feature padding
        f_out_pad = _round_up(f_out, LANE)
        W = jnp.zeros((f_in_pad, f_out_pad), jnp.float32)
        for g in range(G):
            W = W.at[g * in_g:(g + 1) * in_g, g * out_g:(g + 1) * out_g].set(w[g])
        bp = jnp.zeros((1, f_out_pad), jnp.float32).at[0, :f_out].set(b)
        dense.append((W, bp))

    # ReLU placement per the PyTorch forward: only after each *hidden* layer.
    relu = [False] + [True] * (len(dense) - 2) + [False]

    # Layer-0 fold: no activation between the input layer and the first hidden
    # layer, so (x @ W0 + b0) @ W1 + b1 == x @ (W0 @ W1) + (b0 @ W1 + b1).
    if len(dense) >= 2:
        (W0, b0), (W1, b1) = dense[0], dense[1]
        dense = [(W0 @ W1, b0 @ W1 + b1)] + dense[2:]
        relu = [relu[1]] + relu[2:]

    # TODO(synk): add a K/N-tiled accumulator fallback (extra grid axis + f32
    # scratch + pl.when init/finalize) once sum(padded weights) approaches ~half
    # of per-generation VMEM (~24-32 MiB on v7x).
    return [(w.astype(weight_dtype), b.astype(jnp.float32), r)
            for (w, b), r in zip(dense, relu)]


# ---------------------------------------------------------------------------
# Pure-JAX reference (grouped einsum, f32) for correctness check
# ---------------------------------------------------------------------------
def _ref_grouped_linear(x, w, b, apply_relu):
    G, in_g, out_g = w.shape
    B = x.shape[0]
    y = jnp.einsum("bgi,gio->bgo", x.reshape(B, G, in_g), w) + b.reshape(1, G, out_g)
    y = y.reshape(B, G * out_g)
    return jnp.maximum(y, 0.0) if apply_relu else y


def _ref_forward(params, x):
    w0, b0 = params[0]
    out = _ref_grouped_linear(x, w0, b0, False)          # input layer, no activation
    for w, b in params[1:-1]:
        out = _ref_grouped_linear(out, w, b, True)       # hidden + relu (dropout=Identity)
    wl, bl = params[-1]
    return _ref_grouped_linear(out, wl, bl, False)       # output layer


if __name__ == "__main__":
    # Hyperparameters implied by the module's build_model / forward
    input_size = 16
    hidden_sizes = [32, 32]
    output_size = 8
    num_estimators = 4
    alpha = 2
    gamma = 1
    batch = 8            # packed batch (num_estimators folds into the batch upstream)

    key = jax.random.PRNGKey(0)
    k_params, k_x = jax.random.split(key)
    params = init_packed_mlp(k_params, input_size, hidden_sizes, output_size,
                             alpha, num_estimators, gamma)
    layers = prepare_dense_params(params)
    x = jax.random.normal(k_x, (batch, input_size), jnp.float32)

    out_features = output_size * num_estimators
    out = fused_packed_mlp(x, layers, out_features)
    out = jax.block_until_ready(out)

    ref = _ref_forward(params, x)
    assert out.shape == (batch, out_features), out.shape
    max_err = float(jnp.max(jnp.abs(out - ref)))
    assert jnp.allclose(out, ref, atol=5e-2, rtol=5e-2), \
        f"mismatch vs reference (max |diff| = {max_err})"

    print("KERNEL_OK")
</pallas_src>

<mosaic_0001>
module attributes {stable_mosaic.version = 11 : i64} {
  func.func @_fused_mlp_kernel(%arg0: i32, %arg1: memref<8x16xf32, #tpu.memory_space<vmem>>, %arg2: memref<16x128xbf16, #tpu.memory_space<vmem>>, %arg3: memref<1x128xf32, #tpu.memory_space<vmem>>, %arg4: memref<128x128xbf16, #tpu.memory_space<vmem>>, %arg5: memref<1x128xf32, #tpu.memory_space<vmem>>, %arg6: memref<8x128xf32, #tpu.memory_space<vmem>>) attributes {dimension_semantics = [#tpu.dimension_semantics<parallel>], iteration_bounds = array<i64: 2>, scalar_prefetch = 0 : i64, scratch_operands = 0 : i64, tpu.core_type = #tpu.core_type<tc>, window_params = [{transform_indices = @transform_0, window_bounds = array<i64: 8, 16>}, {pipeline_mode = #tpu.pipeline_mode<synchronous>, transform_indices = @transform_1, window_bounds = array<i64: 16, 128>}, {pipeline_mode = #tpu.pipeline_mode<synchronous>, transform_indices = @transform_2, window_bounds = array<i64: 1, 128>}, {pipeline_mode = #tpu.pipeline_mode<synchronous>, transform_indices = @transform_3, window_bounds = array<i64: 128, 128>}, {pipeline_mode = #tpu.pipeline_mode<synchronous>, transform_indices = @transform_4, window_bounds = array<i64: 1, 128>}, {transform_indices = @transform_5, window_bounds = array<i64: 8, 128>}]} {
    %c0 = arith.constant 0 : index
    %c0_0 = arith.constant 0 : index
    %0 = vector.load %arg1[%c0, %c0_0] : memref<8x16xf32, #tpu.memory_space<vmem>>, vector<8x16xf32>
    %c0_1 = arith.constant 0 : index
    %c0_2 = arith.constant 0 : index
    %1 = vector.load %arg2[%c0_1, %c0_2] : memref<16x128xbf16, #tpu.memory_space<vmem>>, vector<16x128xbf16>
    %c0_3 = arith.constant 0 : index
    %c0_4 = arith.constant 0 : index
    %2 = vector.load %arg3[%c0_3, %c0_4] : memref<1x128xf32, #tpu.memory_space<vmem>>, vector<1x128xf32>
    %3 = arith.truncf %0 : vector<8x16xf32> to vector<8x16xbf16>
    %cst = arith.constant dense<0.000000e+00> : vector<8x128xf32>
    %4 = tpu.matmul %3, %1, %cst {dimension_numbers = #tpu.dot_dimension_numbers<[1], [0], [0], [1], [0, 0, 1, 1], [], []>} : vector<8x16xbf16>, vector<16x128xbf16>, vector<8x128xf32> -> vector<8x128xf32>
    %5 = vector.broadcast %2 : vector<1x128xf32> to vector<8x128xf32>
    %6 = arith.addf %4, %5 : vector<8x128xf32>
    %cst_5 = arith.constant 0.000000e+00 : f32
    %7 = vector.broadcast %cst_5 : f32 to vector<8x128xf32>
    %8 = arith.maximumf %6, %7 : vector<8x128xf32>
    %c0_6 = arith.constant 0 : index
    %c0_7 = arith.constant 0 : index
    %9 = vector.load %arg4[%c0_6, %c0_7] : memref<128x128xbf16, #tpu.memory_space<vmem>>, vector<128x128xbf16>
    %c0_8 = arith.constant 0 : index
    %c0_9 = arith.constant 0 : index
    %10 = vector.load %arg5[%c0_8, %c0_9] : memref<1x128xf32, #tpu.memory_space<vmem>>, vector<1x128xf32>
    %11 = arith.truncf %8 : vector<8x128xf32> to vector<8x128xbf16>
    %cst_10 = arith.constant dense<0.000000e+00> : vector<8x128xf32>
    %12 = tpu.matmul %11, %9, %cst_10 {dimension_numbers = #tpu.dot_dimension_numbers<[1], [0], [0], [1], [0, 0, 1, 1], [], []>} : vector<8x128xbf16>, vector<128x128xbf16>, vector<8x128xf32> -> vector<8x128xf32>
    %13 = vector.broadcast %10 : vector<1x128xf32> to vector<8x128xf32>
    %14 = arith.addf %12, %13 : vector<8x128xf32>
    %c0_11 = arith.constant 0 : index
    %c0_12 = arith.constant 0 : index
    %15 = vector.load %arg6[%c0_11, %c0_12] : memref<8x128xf32, #tpu.memory_space<vmem>>, vector<8x128xf32>
    tpu.vector_store %arg6[%c0_11, %c0_12], %14 {strides = array<i32>} : memref<8x128xf32, #tpu.memory_space<vmem>>, vector<8x128xf32>,
    return
  }
  func.func @transform_0(%arg0: i32) -> (i32, i32) {
    %c0_i32 = arith.constant 0 : i32
    %c0_i32_0 = arith.constant 0 : i32
    return %arg0, %c0_i32 : i32, i32
  }
  func.func @transform_1(%arg0: i32) -> (i32, i32) {
    %c0_i32 = arith.constant 0 : i32
    %c0_i32_0 = arith.constant 0 : i32
    %c0_i32_1 = arith.constant 0 : i32
    return %c0_i32, %c0_i32_0 : i32, i32
  }
  func.func @transform_2(%arg0: i32) -> (i32, i32) {
    %c0_i32 = arith.constant 0 : i32
    %c0_i32_0 = arith.constant 0 : i32
    %c0_i32_1 = arith.constant 0 : i32
    return %c0_i32, %c0_i32_0 : i32, i32
  }
  func.func @transform_3(%arg0: i32) -> (i32, i32) {
    %c0_i32 = arith.constant 0 : i32
    %c0_i32_0 = arith.constant 0 : i32
    %c0_i32_1 = arith.constant 0 : i32
    return %c0_i32, %c0_i32_0 : i32, i32
  }
  func.func @transform_4(%arg0: i32) -> (i32, i32) {
    %c0_i32 = arith.constant 0 : i32
    %c0_i32_0 = arith.constant 0 : i32
    %c0_i32_1 = arith.constant 0 : i32
    return %c0_i32, %c0_i32_0 : i32, i32
  }
  func.func @transform_5(%arg0: i32) -> (i32, i32) {
    %c0_i32 = arith.constant 0 : i32
    %c0_i32_0 = arith.constant 0 : i32
    return %arg0, %c0_i32 : i32, i32
  }
}

module attributes {stable_mosaic.version = 11 : i64} {
  func.func @_fused_mlp_kernel(%arg0: i32, %arg1: memref<8x16xf32, #tpu.memory_space<vmem>>, %arg2: memref<16x128xbf16, #tpu.memory_space<vmem>>, %arg3: memref<1x128xf32, #tpu.memory_space<vmem>>, %arg4: memref<128x128xbf16, #tpu.memory_space<vmem>>, %arg5: memref<1x128xf32, #tpu.memory_space<vmem>>, %arg6: memref<8x128xf32, #tpu.memory_space<vmem>>) attributes {dimension_semantics = [#tpu.dimension_semantics<parallel>], iteration_bounds = array<i64: 2>, scalar_prefetch = 0 : i64, scratch_operands = 0 : i64, tpu.core_type = #tpu.core_type<tc>, window_params = [{transform_indices = @transform_0, window_bounds = array<i64: 8, 16>}, {pipeline_mode = #tpu.pipeline_mode<synchronous>, transform_indices = @transform_1, window_bounds = array<i64: 16, 128>}, {pipeline_mode = #tpu.pipeline_mode<synchronous>, transform_indices = @transform_2, window_bounds = array<i64: 1, 128>}, {pipeline_mode = #tpu.pipeline_mode<synchronous>, transform_indices = @transform_3, window_bounds = array<i64: 128, 128>}, {pipeline_mode = #tpu.pipeline_mode<synchronous>, transform_indices = @transform_4, window_bounds = array<i64: 1, 128>}, {transform_indices = @transform_5, window_bounds = array<i64: 8, 128>}]} {
    %c0 = arith.constant 0 : index
    %c0_0 = arith.constant 0 : index
    %0 = vector.load %arg1[%c0, %c0_0] : memref<8x16xf32, #tpu.memory_space<vmem>>, vector<8x16xf32>
    %c0_1 = arith.constant 0 : index
    %c0_2 = arith.constant 0 : index
    %1 = vector.load %arg2[%c0_1, %c0_2] : memref<16x128xbf16, #tpu.memory_space<vmem>>, vector<16x128xbf16>
    %c0_3 = arith.constant 0 : index
    %c0_4 = arith.constant 0 : index
    %2 = vector.load %arg3[%c0_3, %c0_4] : memref<1x128xf32, #tpu.memory_space<vmem>>, vector<1x128xf32>
    %3 = arith.truncf %0 : vector<8x16xf32> to vector<8x16xbf16>
    %cst = arith.constant dense<0.000000e+00> : vector<8x128xf32>
    %4 = tpu.matmul %3, %1, %cst {dimension_numbers = #tpu.dot_dimension_numbers<[1], [0], [0], [1], [0, 0, 1, 1], [], []>} : vector<8x16xbf16>, vector<16x128xbf16>, vector<8x128xf32> -> vector<8x128xf32>
    %5 = vector.broadcast %2 : vector<1x128xf32> to vector<8x128xf32>
    %6 = arith.addf %4, %5 : vector<8x128xf32>
    %cst_5 = arith.constant 0.000000e+00 : f32
    %7 = vector.broadcast %cst_5 : f32 to vector<8x128xf32>
    %8 = arith.maximumf %6, %7 : vector<8x128xf32>
    %c0_6 = arith.constant 0 : index
    %c0_7 = arith.constant 0 : index
    %9 = vector.load %arg4[%c0_6, %c0_7] : memref<128x128xbf16, #tpu.memory_space<vmem>>, vector<128x128xbf16>
    %c0_8 = arith.constant 0 : index
    %c0_9 = arith.constant 0 : index
    %10 = vector.load %arg5[%c0_8, %c0_9] : memref<1x128xf32, #tpu.memory_space<vmem>>, vector<1x128xf32>
    %11 = arith.truncf %8 : vector<8x128xf32> to vector<8x128xbf16>
    %cst_10 = arith.constant dense<0.000000e+00> : vector<8x128xf32>
    %12 = tpu.matmul %11, %9, %cst_10 {dimension_numbers = #tpu.dot_dimension_numbers<[1], [0], [0], [1], [0, 0, 1, 1], [], []>} : vector<8x128xbf16>, vector<128x128xbf16>, vector<8x128xf32> -> vector<8x128xf32>
    %13 = vector.broadcast %10 : vector<1x128xf32> to vector<8x128xf32>
    %14 = arith.addf %12, %13 : vector<8x128xf32>
    %c0_11 = arith.constant 0 : index
    %c0_12 = arith.constant 0 : index
    %15 = vector.load %arg6[%c0_11, %c0_12] : memref<8x128xf32, #tpu.memory_space<vmem>>, vector<8x128xf32>
    tpu.vector_store %arg6[%c0_11, %c0_12], %14 {strides = array<i32>} : memref<8x128xf32, #tpu.memory_space<vmem>>, vector<8x128xf32>,
    return
  }
  func.func @transform_0(%arg0: i32) -> (i32, i32) {
    %c0_i32 = arith.constant 0 : i32
    %c0_i32_0 = arith.constant 0 : i32
    return %arg0, %c0_i32 : i32, i32
  }
  func.func @transform_1(%arg0: i32) -> (i32, i32) {
    %c0_i32 = arith.constant 0 : i32
    %c0_i32_0 = arith.constant 0 : i32
    %c0_i32_1 = arith.constant 0 : i32
    return %c0_i32, %c0_i32_0 : i32, i32
  }
  func.func @transform_2(%arg0: i32) -> (i32, i32) {
    %c0_i32 = arith.constant 0 : i32
    %c0_i32_0 = arith.constant 0 : i32
    %c0_i32_1 = arith.constant 0 : i32
    return %c0_i32, %c0_i32_0 : i32, i32
  }
  func.func @transform_3(%arg0: i32) -> (i32, i32) {
    %c0_i32 = arith.constant 0 : i32
    %c0_i32_0 = arith.constant 0 : i32
    %c0_i32_1 = arith.constant 0 : i32
    return %c0_i32, %c0_i32_0 : i32, i32
  }
  func.func @transform_4(%arg0: i32) -> (i32, i32) {
    %c0_i32 = arith.constant 0 : i32
    %c0_i32_0 = arith.constant 0 : i32
    %c0_i32_1 = arith.constant 0 : i32
    return %c0_i32, %c0_i32_0 : i32, i32
  }
  func.func @transform_5(%arg0: i32) -> (i32, i32) {
    %c0_i32 = arith.constant 0 : i32
    %c0_i32_0 = arith.constant 0 : i32
    return %arg0, %c0_i32 : i32, i32
  }
}

</mosaic_0001>

<bundles_post_ra>
// kernel: tpu_custom_call.1
= control target key start
LH: loop header
LB: loop body
LE: loop exit
PB: predicated region body
PF: predicated region fallthrough
CT: control target
= control target key end

     0   :  { %10 = vsyncpa [#allocation3], 0  ;;  %s1068_s0 = inlined_call_operand.hbm [shape: f32[16,16], index: 0, kind: input, shape index: {}]   ;;  %s1069_s1 = inlined_call_operand.hbm [shape: bf16[16,128], index: 1, kind: input, shape index: {}]   ;;  %s1070_s2 = inlined_call_operand.vmem [shape: f32[1,128], index: 2, kind: input, shape index: {}]   ;;  %s1071_s3 = inlined_call_operand.hbm [shape: bf16[128,128], index: 3, kind: input, shape index: {}]   ;;  %s1072_s4 = inlined_call_operand.vmem [shape: f32[1,128], index: 4, kind: input, shape index: {}]   ;;  %s1073_s5 = inlined_call_operand.hbm [shape: f32[16,128], index: 5, kind: output, shape index: {}]  }
   0x1   :  { %12 = vsyncpa [#allocation3 + $0x1], 0 }
   0x2   :  { %13 = vsyncpa [#allocation6], 0 }
   0x3   :  { %14 = vsyncpa [#allocation4], 0 }
   0x4   :  { %16 = vsyncpa [#allocation4 + $0x1], 0  ;;  %s881_s18 = smov 0   ;;  %s883_s19 = smov 0  }
   0x5   :  { %s885_s20 = smov 0   ;;  %s887_s21 = smov 0  }
   0x6 LB: > { %s902_s22 = sadd.s32 4294967295, %s841_s21   ;;  %s548_s23 = sadd.s32 4294967294, %s841_s21   ;;  %s841_s21 = sphi %s887_s21, %s1095_s21   ;;  %s837_s20 = sphi %s885_s20, %s1094_s20   ;;  %s833_s19 = sphi %s883_s19, %s1093_s19   ;;  %s829_s18 = sphi %s881_s18, %s1092_s18  }
   0x7   : > { %p42_p0 = scmp.ne.s32.totalorder %s833_s19, %s829_s18  ;;  %p1074_p1 = scmp.eq.s32.totalorder %s902_s22, 0 }
   0x8   : > { %p156_p3 = scmp.eq.s32.totalorder %s548_s23, 1  ;;  %p549_p5 = scmp.ge.s32.totalorder %s841_s21, 1 }
   0x9   : > { %p911_p4 = por %p1074_p1, %p42_p0  ;;  %p163_p7 = scmp.lt.s32.totalorder %s841_s21, 3 }
   0xa   : > { %p916_p6 = por %p156_p3, %p42_p0  ;;  %s843_s27 = smov [#allocation5]  }
   0xb   : > { %s1078_s24 = scalar_select %p911_p4, 1, 0 }
   0xc   : > { %s1079_s25 = scalar_select %p916_p6, 1, 0 }
   0xd   : > { %p921_p8 = pnand %p549_p5, %p163_p7  ;;  %s175_s28 = sshll.u32 %s843_s27, 4  ;;  %s176_s28 = int_to_ptr.vmem [resolvable:$true] %s175_s28 }
   0xe   : > { %s844_s30 = smov [#allocation7]   ;;  %s704_s7 = scalar_lea.vmem %s176_s28, 128 }
   0xf   : > { %s1080_s26 = scalar_select %p921_p8, 1, 0 }
  0x10   : > { %p625_p9 = pneg %p921_p8  ;;  %s191_s6 = sshll.u32 %s844_s30, 4  ;;  %s192_s6 = int_to_ptr.vmem [resolvable:$true] %s191_s6 }
  0x11   : > { %p705_p13 = scmp.ne.s32.totalorder %s176_s28, %s704_s7  ;;  %p712_p5 = scmp.lt.s32.totalorder %s176_s28, %s176_s28 }
  0x12   : > { %p930_p11 = pnand %p625_p9, %p1074_p1  ;;  %p713_p7 = scmp.lt.s32.totalorder %s704_s7, %s704_s7 }
  0x14   : > { %p695_p12 = pneg %p930_p11  ;;  %p714_p10 = por %p713_p7, %p712_p5 }
  0x16   : > { %p707_p0 = pnand %p705_p13, %p695_p12 }
  0x18   : > { %p708_p3 = pneg %p707_p0 }
  0x1a   : > { %p715_p9 = pnand %p714_p10, %p708_p3 }
  0x1c   : > { %718 = shalt.err (!%p715_p9)
}
  0x1d   : > { %s845_s8 = smov 64   ;;  %s846_s9 = smov 4  }
  0x1e   : > { %628 = dma.hbm_to_vmem [thread:$0]  (!%p930_p11), %s1069_s1, 128, %s176_s28, [#allocation6], %s845_s8, %s845_s8, %s846_s9  }
  0x1f   : > { %s730_s12 = scalar_lea.vmem %s192_s6, 1024  ;;  %p738_p2 = scmp.lt.s32.totalorder %s192_s6, %s192_s6 }
  0x20   : > { %p731_p1 = scmp.ne.s32.totalorder %s192_s6, %s730_s12  ;;  %p739_p6 = scmp.lt.s32.totalorder %s730_s12, %s730_s12 }
  0x22   : > { %p733_p13 = pnand %p731_p1, %p695_p12  ;;  %p740_p5 = por %p739_p6, %p738_p2 }
  0x24   : > { %p734_p0 = pneg %p733_p13 }
  0x26   : > { %p741_p10 = pnand %p740_p5, %p734_p0 }
  0x28   : > { %744 = shalt.err (!%p741_p10)
}
  0x29   : > { %631 = dma.hbm_to_vmem [thread:$0]  (!%p930_p11), %s1071_s3, 1024, %s192_s6, [#allocation6], %s845_s8, %s845_s8, %s846_s9  }
  0x2a   : > { %s953_s15 = sadd.s32 1, %s841_s21   ;;  %s29_s16 = sadd.s32 1, %s837_s20 }
  0x2b   : > { %s26_s17 = ssub.s32 %s841_s21, %s953_s15  ;;  %p36_p1 = scmp.ne.s32.totalorder %s837_s20, %s833_s19 }
  0x2c   : > { %p27_p2 = scmp.eq.s32.totalorder %s26_s17, 0  ;;  %p37_p6 = scmp.eq.s32.totalorder %s841_s21, 0 }
  0x2d   : > { %p1082_p12 = scmp.eq.s32.totalorder %s902_s22, 1  ;;  %p642_p7 = scmp.lt.s32.totalorder %s841_s21, 2 }
  0x2e   : > { %s969_s27 = scalar_select %p27_p2, %s837_s20, %s29_s16  }
  0x2f   : > { %p963_p3 = por %p1082_p12, %p36_p1  ;;  %p38_p9 = por %p37_p6, %p36_p1 }
  0x30   : > { %s208_s28 = sand.u32 1, %s837_s20   ;;  %s554_s30 = sshll.u32 %s841_s21, 7 }
  0x31   : > { %s1083_s23 = scalar_select %p963_p3, 1, 0 }
  0x32   : > { %s553_s29 = sshll.u32 %s208_s28, 3  ;;  %s976_s8 = scalar_lea.hbm %s1068_s0, %s554_s30 }
  0x33   : > { %s212_s9 = scalar_lea.vmem [#allocation2], %s553_s29  ;;  %p978_p11 = pnand %p642_p7, %p38_p9 }
  0x34   : > { %s219_s10 = sshll.u32 %s212_s9, 4  ;;  %s209_s12 = scalar_lea.sflag [#allocation3], %s208_s28  ;;  %s220_s10 = int_to_ptr.vmem [resolvable:$true] %s219_s10 }
  0x35   : > { %s745_s13 = scalar_lea.hbm %s976_s8, 128  ;;  %p747_p0 = pneg %p978_p11 }
  0x36   : > { %p746_p13 = scmp.ne.s32.totalorder %s976_s8, %s745_s13  ;;  %s750_s17 = scalar_lea.hbm %s1068_s0, 256 }
  0x37   : > { %p751_p1 = scmp.lt.s32.totalorder %s976_s8, %s1068_s0  ;;  %p752_p2 = scmp.lt.s32.totalorder %s750_s17, %s745_s13 }
  0x38   : > { %p748_p5 = pnand %p747_p0, %p746_p13 }
  0x39   : > { %p753_p6 = por %p752_p2, %p751_p1 }
  0x3a   : > { %p749_p10 = pneg %p748_p5 }
  0x3c   : > { %p754_p12 = pnand %p753_p6, %p749_p10 }
  0x3e   : > { %757 = shalt.err (!%p754_p12)
}
  0x3f   : > { %s758_s6 = scalar_lea.vmem %s220_s10, 128  ;;  %s847_s28 = smov [#allocation2]  }
  0x40   : > { %p759_p7 = scmp.ne.s32.totalorder %s220_s10, %s758_s6  ;;  %s763_s7 = sshll.u32 %s847_s28, 4  ;;  %s764_s7 = int_to_ptr.vmem [resolvable:$false] %s763_s7 }
  0x41   : > { %s765_s9 = scalar_lea.vmem %s764_s7, 256  ;;  %p766_p13 = scmp.lt.s32.totalorder %s220_s10, %s764_s7 }
  0x42   : > { %p761_p9 = pnand %p759_p7, %p747_p0  ;;  %p767_p5 = scmp.lt.s32.totalorder %s765_s9, %s758_s6 }
  0x44   : > { %p762_p3 = pneg %p761_p9  ;;  %p768_p4 = por %p767_p5, %p766_p13 }
  0x46   : > { %p769_p8 = pnand %p768_p4, %p762_p3 }
  0x48   : > { %772 = shalt.err (!%p769_p8)
}
  0x49   : > { %635 = dma.hbm_to_vmem [thread:$0]  (!%p978_p11), %s976_s8, 128, %s220_s10, %s209_s12  }
  0x4a   : > { %p1085_p10 = scmp.ne.s32.totalorder %s1080_s26, 0 }
  0x4b   : > { %s999_s13 = sand.u32 (!%p1085_p10), 1, %s833_s19   ;;  %p1086_p4 = scmp.ne.s32.totalorder (!%p1085_p10), %s1078_s24, 0 }
  0x4c   : > { %228 = sbr.rel (%p1085_p10) target bundleno = 499 (0x1f3), region = 40  ;;  %s556_s14 = sshll.u32 (!%p1085_p10), %s999_s13, 3 }
  0x4d   : > { %s231_s16 = scalar_lea.sflag (!%p1085_p10), [#allocation3], %s999_s13  ;;  %s234_s17 = scalar_lea.vmem (!%p1085_p10), [#allocation2], %s556_s14 }
  0x51   : > { %816 = dma.done.wait (%p1086_p4), %s231_s16, 128  }
  0x52   : > { %818 = vsyncadd (%p1086_p4), %s231_s16, 4294967168  ;;  %p1087_p8 = scmp.eq.s32.totalorder %s902_s22, 0 }
  0x54   : > { %820 = dma.done.wait (%p1087_p8), [#allocation6], 1152   ;;  %p1088_p3 = pmov %p1087_p8 }
  0x55   : > { %v848_v0 = vmov 0.0   ;;  %vm849_vm0 = vmmov 0   ;;  %v684_v1 = vld [vmem:[#allocation5] sm:$0xff]   ;;  %v270_v2 = vld [vmem:[%s234_s17] sm:$0xff]  ;;  %vm287_vm1 = vcmask 130048   ;;  %v688_v7 = vld [vmem:[#allocation7 + $0x20] sm:$0xff]  }
  0x56   : > { %822 = vsyncadd (%p1088_p3), [#allocation6], 4294966144  ;;  %587 = vmatprep.subr.bf16.mxu0 %v848_v0  ;;  %589 = vmatprep.mubr.msk.bf16.mxu0 %vm849_vm0, %v848_v0  ;;  %v274_v3 = vpack.c.bf16 %v270_v2, %v270_v2  ;;  %v685_v4 = vld [vmem:[#allocation7 + $0x38] sm:$0xff]   ;;  %v686_v5 = vld [vmem:[#allocation7 + $0x30] sm:$0xff]   ;;  %s573_s11 = sshll.u32 %s902_s22, 7  ;;  %s268_s12 = scalar_lea.vmem [#allocation8], %s556_s14 }
  0x57   : > { %593 = vmatprep.subr.bf16.mxu1 %v848_v0  ;;  %609 = vmatprep.mubr.msk.bf16.mxu1 %vm849_vm0, %v848_v0  ;;  %v687_v6 = vld [vmem:[#allocation7 + $0x28] sm:$0xff]   ;;  %v689_v8 = vld [vmem:[#allocation7 + $0x18] sm:$0xff]   ;;  %v690_v9 = vld [vmem:[#allocation7 + $0x10] sm:$0xff]   ;;  %s459_s30 = sshll.u32 %s268_s12, 4  ;;  %s1025_s28 = scalar_lea.hbm %s1073_s5, %s573_s11  ;;  %s1027_s30 = int_to_ptr.vmem [resolvable:$true] %s459_s30 }
  0x58   : > { %588 = vmatpush3.bf16.msra.mxu0 %v684_v1  ;;  %594 = vmatpush3.bf16.msra.mxu1 %v685_v4  ;;  %v691_v10 = vld [vmem:[#allocation7 + $0x8] sm:$0xff]   ;;  %v692_v11 = vld [vmem:[#allocation7] sm:$0xff]   ;;  %s446_s7 = scalar_lea.sflag [#allocation4], %s999_s13  ;;  %s773_s22 = scalar_lea.vmem %s1027_s30, 128 }
  0x59   : > { %595 = vmatprep.subr.bf16.mxu1 %v848_v0  ;;  %v560_v12 = vld [vmem:[%s1070_s2] ss:$0 sm:$0xff]  ;;  %p774_p11 = scmp.ne.s32.totalorder %s1027_s30, %s773_s22  ;;  %p1089_p0 = scmp.ne.s32.totalorder %s1083_s23, 0 }
  0x5a   : > { %v563_v20 = vld [vmem:[%s1072_s4] ss:$0 sm:$0xff]  ;;  %s850_s9 = smov [#allocation8]  }
  0x5b   : > { %590 = vmatmul.mubr.msk.bf16.vlgmr.msra.gmra.mxu0 %vm287_vm1, %v274_v3  ;;  %p775_p1 = pnand %p774_p11, %p1089_p0  ;;  %s777_s14 = sshll.u32 %s850_s9, 4  ;;  %s778_s14 = int_to_ptr.vmem [resolvable:$false] %s777_s14 }
  0x5c   : > { %596 = vmatpush3.bf16.msra.mxu1 %v686_v5  ;;  %s779_s16 = scalar_lea.vmem %s778_s14, 256  ;;  %p780_p6 = scmp.lt.s32.totalorder %s1027_s30, %s778_s14 }
  0x5d   : > { %597 = vmatprep.subr.bf16.mxu1 %v848_v0  ;;  %p776_p2 = pneg %p775_p1  ;;  %p781_p12 = scmp.lt.s32.totalorder %s779_s16, %s773_s22 }
  0x5f   : > { %p782_p7 = por %p781_p12, %p780_p6 }
  0x60   : > { %598 = vmatpush3.bf16.msra.mxu1 %v687_v6 }
  0x61   : > { %599 = vmatprep.subr.bf16.mxu1 %v848_v0  ;;  %p783_p9 = pnand %p782_p7, %p776_p2 }
  0x64   : > { %600 = vmatpush3.bf16.msra.mxu1 %v688_v7 }
  0x65   : > { %601 = vmatprep.subr.bf16.mxu1 %v848_v0 }
  0x68   : > { %602 = vmatpush3.bf16.msra.mxu1 %v689_v8 }
  0x69   : > { %603 = vmatprep.subr.bf16.mxu1 %v848_v0 }
  0x6c   : > { %604 = vmatpush3.bf16.msra.mxu1 %v690_v9 }
  0x6d   : > { %605 = vmatprep.subr.bf16.mxu1 %v848_v0 }
  0x70   : > { %606 = vmatpush3.bf16.msra.mxu1 %v691_v10 }
  0x71   : > { %607 = vmatprep.subr.bf16.mxu1 %v848_v0 }
  0x74   : > { %608 = vmatpush3.bf16.msra.mxu1 %v692_v11 }
 0x11b   : > { %v325_v13 = vpop.f32.mrf.mxu0 }
 0x11c   : > { %v326_v14 = vadd.f32 %v560_v12, %v325_v13 }
 0x11d   : > { %v591_v15 = vpop.f32.mrf.mxu0 }
 0x11e   : > { %v331_v16 = vmax.f32 %v326_v14, 0.0 }
 0x11f   : > { %v328_v17 = vpop.f32.mrf.mxu0 }
 0x120   : > { %v349_v18 = vpack.c.bf16 %v331_v16, %v331_v16 }
 0x121   : > { %v592_v19 = vpop.f32.mrf.mxu0 }
 0x122   : > { %610 = vmatmul.mubr.bf16.vlgmr.msra.gmra.mxu1 %v349_v18 }
 0x1e2   : > { %v438_v21 = vpop.f32.mrf.mxu1 }
 0x1e3   : > { %v439_v22 = vadd.f32 %v563_v20, %v438_v21 }
 0x1e4   : > { %v611_v23 = vpop.f32.mrf.mxu1 }
 0x1e5   : > { %444 = vst [vmem:[%s268_s12] sm:$0xff] %v439_v22 }
 0x1e6   : > { %v441_v24 = vpop.f32.mrf.mxu1 }
 0x1e7   : > { %786 = shalt.err (!%p783_p9)
}
 0x1e8   : > { %s787_s17 = scalar_lea.hbm %s1025_s28, 128  ;;  %s791_s26 = scalar_lea.hbm %s1073_s5, 256 }
 0x1e9   : > { %p788_p13 = scmp.ne.s32.totalorder %s1025_s28, %s787_s17  ;;  %p792_p4 = scmp.lt.s32.totalorder %s1025_s28, %s1073_s5 }
 0x1ea   : > { %p793_p8 = scmp.lt.s32.totalorder %s791_s26, %s787_s17 }
 0x1eb   : > { %p789_p5 = pnand %p788_p13, %p1089_p0 }
 0x1ec   : > { %p794_p3 = por %p793_p8, %p792_p4 }
 0x1ed   : > { %p790_p10 = pneg %p789_p5 }
 0x1ef   : > { %p795_p11 = pnand %p794_p3, %p790_p10 }
 0x1f1   : > { %798 = shalt.err (!%p795_p11)
}
 0x1f2   : > { %623 = dma.vmem_to_hbm [thread:$0]  (%p1089_p0), %s1027_s30, 128, %s1025_s28, %s446_s7   ;;  %v612_v25 = vpop.f32.mrf.mxu1 }
 0x1f3 PF: > { %s471_s11 = sand.u32 1, %s829_s18   ;;  %p1090_p1 = scmp.ne.s32.totalorder %s1079_s25, 0 }
 0x1f4   : > { %p1091_p2 = scmp.ge.s32.totalorder %s841_s21, 2  ;;  %s472_s12 = scalar_lea.sflag [#allocation4], %s471_s11 }
 0x1f6   : > { %p637_p6 = pnand %p1091_p2, %p1090_p1 }
 0x1f8   : > { %p638_p12 = pneg %p637_p6 }
 0x1fa   : > { %824 = dma.done.wait (%p638_p12), %s472_s12, 128  }
 0x1fb   : > { %826 = vsyncadd (%p638_p12), %s472_s12, 4294967168  ;;  %p19_p7 = scmp.ge.s32.totalorder %s953_s15, 4   ;;  %s1092_s18 = smov %s833_s19 }
 0x1fc   : > { %s1093_s19 = smov %s837_s20  ;;  %s1094_s20 = smov %s969_s27 }
 0x1fd   : > { %s1095_s21 = smov %s953_s15  ;;  %21 = sbr.rel (!%p19_p7) target bundleno = 6 (0x6), region = 93 }
 0x202   :  { %477 = vsyncpa [#allocation3], 1 }
 0x203   :  { %479 = vsyncpa [#allocation3 + $0x1], 1 }
 0x204   :  { %480 = vsyncpa [#allocation6], 1 }
 0x205   :  { %481 = vsyncpa [#allocation4], 1 }
 0x206   :  { %483 = vsyncpa [#allocation4 + $0x1], 1 }

// kernel: tpu_custom_call.1
= control target key start
LH: loop header
LB: loop body
LE: loop exit
PB: predicated region body
PF: predicated region fallthrough
CT: control target
= control target key end

     0   :  { %10 = vsyncpa [#allocation3], 0  ;;  %s1068_s0 = inlined_call_operand.hbm [shape: f32[16,16], index: 0, kind: input, shape index: {}]   ;;  %s1069_s1 = inlined_call_operand.hbm [shape: bf16[16,128], index: 1, kind: input, shape index: {}]   ;;  %s1070_s2 = inlined_call_operand.vmem [shape: f32[1,128], index: 2, kind: input, shape index: {}]   ;;  %s1071_s3 = inlined_call_operand.hbm [shape: bf16[128,128], index: 3, kind: input, shape index: {}]   ;;  %s1072_s4 = inlined_call_operand.vmem [shape: f32[1,128], index: 4, kind: input, shape index: {}]   ;;  %s1073_s5 = inlined_call_operand.hbm [shape: f32[16,128], index: 5, kind: output, shape index: {}]  }
   0x1   :  { %12 = vsyncpa [#allocation3 + $0x1], 0 }
   0x2   :  { %13 = vsyncpa [#allocation6], 0 }
   0x3   :  { %14 = vsyncpa [#allocation4], 0 }
   0x4   :  { %16 = vsyncpa [#allocation4 + $0x1], 0  ;;  %s881_s18 = smov 0   ;;  %s883_s19 = smov 0  }
   0x5   :  { %s885_s20 = smov 0   ;;  %s887_s21 = smov 0  }
   0x6 LB: > { %s902_s22 = sadd.s32 4294967295, %s841_s21   ;;  %s548_s23 = sadd.s32 4294967294, %s841_s21   ;;  %s841_s21 = sphi %s887_s21, %s1095_s21   ;;  %s837_s20 = sphi %s885_s20, %s1094_s20   ;;  %s833_s19 = sphi %s883_s19, %s1093_s19   ;;  %s829_s18 = sphi %s881_s18, %s1092_s18  }
   0x7   : > { %p42_p0 = scmp.ne.s32.totalorder %s833_s19, %s829_s18  ;;  %p1074_p1 = scmp.eq.s32.totalorder %s902_s22, 0 }
   0x8   : > { %p156_p3 = scmp.eq.s32.totalorder %s548_s23, 1  ;;  %p549_p5 = scmp.ge.s32.totalorder %s841_s21, 1 }
   0x9   : > { %p911_p4 = por %p1074_p1, %p42_p0  ;;  %p163_p7 = scmp.lt.s32.totalorder %s841_s21, 3 }
   0xa   : > { %p916_p6 = por %p156_p3, %p42_p0  ;;  %s843_s27 = smov [#allocation5]  }
   0xb   : > { %s1078_s24 = scalar_select %p911_p4, 1, 0 }
   0xc   : > { %s1079_s25 = scalar_select %p916_p6, 1, 0 }
   0xd   : > { %p921_p8 = pnand %p549_p5, %p163_p7  ;;  %s175_s28 = sshll.u32 %s843_s27, 4  ;;  %s176_s28 = int_to_ptr.vmem [resolvable:$true] %s175_s28 }
   0xe   : > { %s844_s30 = smov [#allocation7]   ;;  %s704_s7 = scalar_lea.vmem %s176_s28, 128 }
   0xf   : > { %s1080_s26 = scalar_select %p921_p8, 1, 0 }
  0x10   : > { %p625_p9 = pneg %p921_p8  ;;  %s191_s6 = sshll.u32 %s844_s30, 4  ;;  %s192_s6 = int_to_ptr.vmem [resolvable:$true] %s191_s6 }
  0x11   : > { %p705_p13 = scmp.ne.s32.totalorder %s176_s28, %s704_s7  ;;  %p712_p5 = scmp.lt.s32.totalorder %s176_s28, %s176_s28 }
  0x12   : > { %p930_p11 = pnand %p625_p9, %p1074_p1  ;;  %p713_p7 = scmp.lt.s32.totalorder %s704_s7, %s704_s7 }
  0x14   : > { %p695_p12 = pneg %p930_p11  ;;  %p714_p10 = por %p713_p7, %p712_p5 }
  0x16   : > { %p707_p0 = pnand %p705_p13, %p695_p12 }
  0x18   : > { %p708_p3 = pneg %p707_p0 }
  0x1a   : > { %p715_p9 = pnand %p714_p10, %p708_p3 }
  0x1c   : > { %718 = shalt.err (!%p715_p9)
}
  0x1d   : > { %s845_s8 = smov 64   ;;  %s846_s9 = smov 4  }
  0x1e   : > { %628 = dma.hbm_to_vmem [thread:$0]  (!%p930_p11), %s1069_s1, 128, %s176_s28, [#allocation6], %s845_s8, %s845_s8, %s846_s9  }
  0x1f   : > { %s730_s12 = scalar_lea.vmem %s192_s6, 1024  ;;  %p738_p2 = scmp.lt.s32.totalorder %s192_s6, %s192_s6 }
  0x20   : > { %p731_p1 = scmp.ne.s32.totalorder %s192_s6, %s730_s12  ;;  %p739_p6 = scmp.lt.s32.totalorder %s730_s12, %s730_s12 }
  0x22   : > { %p733_p13 = pnand %p731_p1, %p695_p12  ;;  %p740_p5 = por %p739_p6, %p738_p2 }
  0x24   : > { %p734_p0 = pneg %p733_p13 }
  0x26   : > { %p741_p10 = pnand %p740_p5, %p734_p0 }
  0x28   : > { %744 = shalt.err (!%p741_p10)
}
  0x29   : > { %631 = dma.hbm_to_vmem [thread:$0]  (!%p930_p11), %s1071_s3, 1024, %s192_s6, [#allocation6], %s845_s8, %s845_s8, %s846_s9  }
  0x2a   : > { %s953_s15 = sadd.s32 1, %s841_s21   ;;  %s29_s16 = sadd.s32 1, %s837_s20 }
  0x2b   : > { %s26_s17 = ssub.s32 %s841_s21, %s953_s15  ;;  %p36_p1 = scmp.ne.s32.totalorder %s837_s20, %s833_s19 }
  0x2c   : > { %p27_p2 = scmp.eq.s32.totalorder %s26_s17, 0  ;;  %p37_p6 = scmp.eq.s32.totalorder %s841_s21, 0 }
  0x2d   : > { %p1082_p12 = scmp.eq.s32.totalorder %s902_s22, 1  ;;  %p642_p7 = scmp.lt.s32.totalorder %s841_s21, 2 }
  0x2e   : > { %s969_s27 = scalar_select %p27_p2, %s837_s20, %s29_s16  }
  0x2f   : > { %p963_p3 = por %p1082_p12, %p36_p1  ;;  %p38_p9 = por %p37_p6, %p36_p1 }
  0x30   : > { %s208_s28 = sand.u32 1, %s837_s20   ;;  %s554_s30 = sshll.u32 %s841_s21, 7 }
  0x31   : > { %s1083_s23 = scalar_select %p963_p3, 1, 0 }
  0x32   : > { %s553_s29 = sshll.u32 %s208_s28, 3  ;;  %s976_s8 = scalar_lea.hbm %s1068_s0, %s554_s30 }
  0x33   : > { %s212_s9 = scalar_lea.vmem [#allocation2], %s553_s29  ;;  %p978_p11 = pnand %p642_p7, %p38_p9 }
  0x34   : > { %s219_s10 = sshll.u32 %s212_s9, 4  ;;  %s209_s12 = scalar_lea.sflag [#allocation3], %s208_s28  ;;  %s220_s10 = int_to_ptr.vmem [resolvable:$true] %s219_s10 }
  0x35   : > { %s745_s13 = scalar_lea.hbm %s976_s8, 128  ;;  %p747_p0 = pneg %p978_p11 }
  0x36   : > { %p746_p13 = scmp.ne.s32.totalorder %s976_s8, %s745_s13  ;;  %s750_s17 = scalar_lea.hbm %s1068_s0, 256 }
  0x37   : > { %p751_p1 = scmp.lt.s32.totalorder %s976_s8, %s1068_s0  ;;  %p752_p2 = scmp.lt.s32.totalorder %s750_s17, %s745_s13 }
  0x38   : > { %p748_p5 = pnand %p747_p0, %p746_p13 }
  0x39   : > { %p753_p6 = por %p752_p2, %p751_p1 }
  0x3a   : > { %p749_p10 = pneg %p748_p5 }
  0x3c   : > { %p754_p12 = pnand %p753_p6, %p749_p10 }
  0x3e   : > { %757 = shalt.err (!%p754_p12)
}
  0x3f   : > { %s758_s6 = scalar_lea.vmem %s220_s10, 128  ;;  %s847_s28 = smov [#allocation2]  }
  0x40   : > { %p759_p7 = scmp.ne.s32.totalorder %s220_s10, %s758_s6  ;;  %s763_s7 = sshll.u32 %s847_s28, 4  ;;  %s764_s7 = int_to_ptr.vmem [resolvable:$false] %s763_s7 }
  0x41   : > { %s765_s9 = scalar_lea.vmem %s764_s7, 256  ;;  %p766_p13 = scmp.lt.s32.totalorder %s220_s10, %s764_s7 }
  0x42   : > { %p761_p9 = pnand %p759_p7, %p747_p0  ;;  %p767_p5 = scmp.lt.s32.totalorder %s765_s9, %s758_s6 }
  0x44   : > { %p762_p3 = pneg %p761_p9  ;;  %p768_p4 = por %p767_p5, %p766_p13 }
  0x46   : > { %p769_p8 = pnand %p768_p4, %p762_p3 }
  0x48   : > { %772 = shalt.err (!%p769_p8)
}
  0x49   : > { %635 = dma.hbm_to_vmem [thread:$0]  (!%p978_p11), %s976_s8, 128, %s220_s10, %s209_s12  }
  0x4a   : > { %p1085_p10 = scmp.ne.s32.totalorder %s1080_s26, 0 }
  0x4b   : > { %s999_s13 = sand.u32 (!%p1085_p10), 1, %s833_s19   ;;  %p1086_p4 = scmp.ne.s32.totalorder (!%p1085_p10), %s1078_s24, 0 }
  0x4c   : > { %228 = sbr.rel (%p1085_p10) target bundleno = 499 (0x1f3), region = 40  ;;  %s556_s14 = sshll.u32 (!%p1085_p10), %s999_s13, 3 }
  0x4d   : > { %s231_s16 = scalar_lea.sflag (!%p1085_p10), [#allocation3], %s999_s13  ;;  %s234_s17 = scalar_lea.vmem (!%p1085_p10), [#allocation2], %s556_s14 }
  0x51   : > { %816 = dma.done.wait (%p1086_p4), %s231_s16, 128  }
  0x52   : > { %818 = vsyncadd (%p1086_p4), %s231_s16, 4294967168  ;;  %p1087_p8 = scmp.eq.s32.totalorder %s902_s22, 0 }
  0x54   : > { %820 = dma.done.wait (%p1087_p8), [#allocation6], 1152   ;;  %p1088_p3 = pmov %p1087_p8 }
  0x55   : > { %v848_v0 = vmov 0.0   ;;  %vm849_vm0 = vmmov 0   ;;  %v684_v1 = vld [vmem:[#allocation5] sm:$0xff]   ;;  %v270_v2 = vld [vmem:[%s234_s17] sm:$0xff]  ;;  %vm287_vm1 = vcmask 130048   ;;  %v688_v7 = vld [vmem:[#allocation7 + $0x20] sm:$0xff]  }
  0x56   : > { %822 = vsyncadd (%p1088_p3), [#allocation6], 4294966144  ;;  %587 = vmatprep.subr.bf16.mxu0 %v848_v0  ;;  %589 = vmatprep.mubr.msk.bf16.mxu0 %vm849_vm0, %v848_v0  ;;  %v274_v3 = vpack.c.bf16 %v270_v2, %v270_v2  ;;  %v685_v4 = vld [vmem:[#allocation7 + $0x38] sm:$0xff]   ;;  %v686_v5 = vld [vmem:[#allocation7 + $0x30] sm:$0xff]   ;;  %s573_s11 = sshll.u32 %s902_s22, 7  ;;  %s268_s12 = scalar_lea.vmem [#allocation8], %s556_s14 }
  0x57   : > { %593 = vmatprep.subr.bf16.mxu1 %v848_v0  ;;  %609 = vmatprep.mubr.msk.bf16.mxu1 %vm849_vm0, %v848_v0  ;;  %v687_v6 = vld [vmem:[#allocation7 + $0x28] sm:$0xff]   ;;  %v689_v8 = vld [vmem:[#allocation7 + $0x18] sm:$0xff]   ;;  %v690_v9 = vld [vmem:[#allocation7 + $0x10] sm:$0xff]   ;;  %s459_s30 = sshll.u32 %s268_s12, 4  ;;  %s1025_s28 = scalar_lea.hbm %s1073_s5, %s573_s11  ;;  %s1027_s30 = int_to_ptr.vmem [resolvable:$true] %s459_s30 }
  0x58   : > { %588 = vmatpush3.bf16.msra.mxu0 %v684_v1  ;;  %594 = vmatpush3.bf16.msra.mxu1 %v685_v4  ;;  %v691_v10 = vld [vmem:[#allocation7 + $0x8] sm:$0xff]   ;;  %v692_v11 = vld [vmem:[#allocation7] sm:$0xff]   ;;  %s446_s7 = scalar_lea.sflag [#allocation4], %s999_s13  ;;  %s773_s22 = scalar_lea.vmem %s1027_s30, 128 }
  0x59   : > { %595 = vmatprep.subr.bf16.mxu1 %v848_v0  ;;  %v560_v12 = vld [vmem:[%s1070_s2] ss:$0 sm:$0xff]  ;;  %p774_p11 = scmp.ne.s32.totalorder %s1027_s30, %s773_s22  ;;  %p1089_p0 = scmp.ne.s32.totalorder %s1083_s23, 0 }
  0x5a   : > { %v563_v20 = vld [vmem:[%s1072_s4] ss:$0 sm:$0xff]  ;;  %s850_s9 = smov [#allocation8]  }
  0x5b   : > { %590 = vmatmul.mubr.msk.bf16.vlgmr.msra.gmra.mxu0 %vm287_vm1, %v274_v3  ;;  %p775_p1 = pnand %p774_p11, %p1089_p0  ;;  %s777_s14 = sshll.u32 %s850_s9, 4  ;;  %s778_s14 = int_to_ptr.vmem [resolvable:$false] %s777_s14 }
  0x5c   : > { %596 = vmatpush3.bf16.msra.mxu1 %v686_v5  ;;  %s779_s16 = scalar_lea.vmem %s778_s14, 256  ;;  %p780_p6 = scmp.lt.s32.totalorder %s1027_s30, %s778_s14 }
  0x5d   : > { %597 = vmatprep.subr.bf16.mxu1 %v848_v0  ;;  %p776_p2 = pneg %p775_p1  ;;  %p781_p12 = scmp.lt.s32.totalorder %s779_s16, %s773_s22 }
  0x5f   : > { %p782_p7 = por %p781_p12, %p780_p6 }
  0x60   : > { %598 = vmatpush3.bf16.msra.mxu1 %v687_v6 }
  0x61   : > { %599 = vmatprep.subr.bf16.mxu1 %v848_v0  ;;  %p783_p9 = pnand %p782_p7, %p776_p2 }
  0x64   : > { %600 = vmatpush3.bf16.msra.mxu1 %v688_v7 }
  0x65   : > { %601 = vmatprep.subr.bf16.mxu1 %v848_v0 }
  0x68   : > { %602 = vmatpush3.bf16.msra.mxu1 %v689_v8 }
  0x69   : > { %603 = vmatprep.subr.bf16.mxu1 %v848_v0 }
  0x6c   : > { %604 = vmatpush3.bf16.msra.mxu1 %v690_v9 }
  0x6d   : > { %605 = vmatprep.subr.bf16.mxu1 %v848_v0 }
  0x70   : > { %606 = vmatpush3.bf16.msra.mxu1 %v691_v10 }
  0x71   : > { %607 = vmatprep.subr.bf16.mxu1 %v848_v0 }
  0x74   : > { %608 = vmatpush3.bf16.msra.mxu1 %v692_v11 }
 0x11b   : > { %v325_v13 = vpop.f32.mrf.mxu0 }
 0x11c   : > { %v326_v14 = vadd.f32 %v560_v12, %v325_v13 }
 0x11d   : > { %v591_v15 = vpop.f32.mrf.mxu0 }
 0x11e   : > { %v331_v16 = vmax.f32 %v326_v14, 0.0 }
 0x11f   : > { %v328_v17 = vpop.f32.mrf.mxu0 }
 0x120   : > { %v349_v18 = vpack.c.bf16 %v331_v16, %v331_v16 }
 0x121   : > { %v592_v19 = vpop.f32.mrf.mxu0 }
 0x122   : > { %610 = vmatmul.mubr.bf16.vlgmr.msra.gmra.mxu1 %v349_v18 }
 0x1e2   : > { %v438_v21 = vpop.f32.mrf.mxu1 }
 0x1e3   : > { %v439_v22 = vadd.f32 %v563_v20, %v438_v21 }
 0x1e4   : > { %v611_v23 = vpop.f32.mrf.mxu1 }
 0x1e5   : > { %444 = vst [vmem:[%s268_s12] sm:$0xff] %v439_v22 }
 0x1e6   : > { %v441_v24 = vpop.f32.mrf.mxu1 }
 0x1e7   : > { %786 = shalt.err (!%p783_p9)
}
 0x1e8   : > { %s787_s17 = scalar_lea.hbm %s1025_s28, 128  ;;  %s791_s26 = scalar_lea.hbm %s1073_s5, 256 }
 0x1e9   : > { %p788_p13 = scmp.ne.s32.totalorder %s1025_s28, %s787_s17  ;;  %p792_p4 = scmp.lt.s32.totalorder %s1025_s28, %s1073_s5 }
 0x1ea   : > { %p793_p8 = scmp.lt.s32.totalorder %s791_s26, %s787_s17 }
 0x1eb   : > { %p789_p5 = pnand %p788_p13, %p1089_p0 }
 0x1ec   : > { %p794_p3 = por %p793_p8, %p792_p4 }
 0x1ed   : > { %p790_p10 = pneg %p789_p5 }
 0x1ef   : > { %p795_p11 = pnand %p794_p3, %p790_p10 }
 0x1f1   : > { %798 = shalt.err (!%p795_p11)
}
 0x1f2   : > { %623 = dma.vmem_to_hbm [thread:$0]  (%p1089_p0), %s1027_s30, 128, %s1025_s28, %s446_s7   ;;  %v612_v25 = vpop.f32.mrf.mxu1 }
 0x1f3 PF: > { %s471_s11 = sand.u32 1, %s829_s18   ;;  %p1090_p1 = scmp.ne.s32.totalorder %s1079_s25, 0 }
 0x1f4   : > { %p1091_p2 = scmp.ge.s32.totalorder %s841_s21, 2  ;;  %s472_s12 = scalar_lea.sflag [#allocation4], %s471_s11 }
 0x1f6   : > { %p637_p6 = pnand %p1091_p2, %p1090_p1 }
 0x1f8   : > { %p638_p12 = pneg %p637_p6 }
 0x1fa   : > { %824 = dma.done.wait (%p638_p12), %s472_s12, 128  }
 0x1fb   : > { %826 = vsyncadd (%p638_p12), %s472_s12, 4294967168  ;;  %p19_p7 = scmp.ge.s32.totalorder %s953_s15, 4   ;;  %s1092_s18 = smov %s833_s19 }
 0x1fc   : > { %s1093_s19 = smov %s837_s20  ;;  %s1094_s20 = smov %s969_s27 }
 0x1fd   : > { %s1095_s21 = smov %s953_s15  ;;  %21 = sbr.rel (!%p19_p7) target bundleno = 6 (0x6), region = 93 }
 0x202   :  { %477 = vsyncpa [#allocation3], 1 }
 0x203   :  { %479 = vsyncpa [#allocation3 + $0x1], 1 }
 0x204   :  { %480 = vsyncpa [#allocation6], 1 }
 0x205   :  { %481 = vsyncpa [#allocation4], 1 }
 0x206   :  { %483 = vsyncpa [#allocation4 + $0x1], 1 }

</bundles_post_ra>
